<compile_context>
chip_gen: v7x
topology: tpu7x:2x2x1
jax: 0.10.0
libtpu: 0.0.40
codegen_flags: <defaults>
</compile_context>

<pallas_src>
import jax
import jax.numpy as jnp
from jax import lax
from jax.experimental import pallas as pl
from jax.experimental.pallas import tpu as pltpu

EPS = 1e-12  # torch.nn.functional.normalize default eps
EPS_SQ = EPS * EPS


def adv_loss_kernel(cls_ref, aux_ref, w1_ref, b1_ref, w2_ref, b2_ref, out_ref):
    # Whole arrays (shapes are small; single invocation, no grid).
    cls_f = cls_ref[...].astype(jnp.float32)    # (B, class_dim)
    aux_f = aux_ref[...].astype(jnp.float32)    # (B, aux_dim)
    B, class_dim = cls_f.shape

    # f1 = l2norm(aux) feeds the matmul, so it needs an elementwise normalize.
    # rsqrt(max(||x||^2, eps^2)) == 1 / max(||x||, eps)  (torch F.normalize).
    aux_sq = jnp.sum(aux_f * aux_f, axis=-1, keepdims=True)          # (B, 1)
    f1 = aux_f * lax.rsqrt(jnp.maximum(aux_sq, EPS_SQ))              # (B, aux_dim)

    # Regressor: Linear -> ReLU -> Linear (MXU matmuls, f32 accumulation).
    h = jnp.dot(f1, w1_ref[...], preferred_element_type=jnp.float32) + b1_ref[...]
    h = jnp.maximum(h, 0.0)                                          # (B, proj_dim)
    r_raw = jnp.dot(h, w2_ref[...], preferred_element_type=jnp.float32) + b2_ref[...]

    # Fold the f0 and r normalizations into per-row scalar denominators:
    #   sum_j (f0_j * r_j)^2
    #     = sum_j (cls_j * r_raw_j)^2 / (max(||cls||^2,eps^2) * max(||r_raw||^2,eps^2))
    cls_sq = jnp.maximum(jnp.sum(cls_f * cls_f, axis=-1, keepdims=True), EPS_SQ)  # (B,1)
    r_sq = jnp.maximum(jnp.sum(r_raw * r_raw, axis=-1, keepdims=True), EPS_SQ)    # (B,1)
    prod = cls_f * r_raw                                              # (B, class_dim)
    row_sum = jnp.sum(prod * prod, axis=-1, keepdims=True)            # (B, 1)
    row_scaled = row_sum / (cls_sq * r_sq)                            # (B, 1)

    # Global mean + negation folded into one sum and a compile-time constant.
    scale = -1.0 / (B * class_dim)
    out_ref[0, 0] = scale * jnp.sum(row_scaled)


def adv_loss(class_features, aux_features, w1, b1, w2, b2):
    out = pl.pallas_call(
        adv_loss_kernel,
        out_shape=jax.ShapeDtypeStruct((1, 1), jnp.float32),
        in_specs=[pl.BlockSpec(memory_space=pltpu.MemorySpace.VMEM)] * 6,
        out_specs=pl.BlockSpec(memory_space=pltpu.MemorySpace.SMEM),
    )(class_features, aux_features, w1, b1, w2, b2)
    return out[0, 0]


def adv_loss_ref(class_features, aux_features, w1, b1, w2, b2):
    # Pure-JAX reference with the original torch F.normalize semantics.
    def l2n(x):
        n = jnp.sqrt(jnp.sum(x * x, axis=-1, keepdims=True))
        return x / jnp.maximum(n, EPS)

    f0 = l2n(class_features.astype(jnp.float32))
    f1 = l2n(aux_features.astype(jnp.float32))
    h = jnp.maximum(f1 @ w1 + b1[0], 0.0)
    r = l2n(h @ w2 + b2[0])
    return -1.0 * jnp.mean(jnp.mean((f0 * r) ** 2, axis=-1))


if __name__ == "__main__":
    # Small shapes consistent with the module's forward:
    #   class_features: (B, class_dim), aux_features: (B, aux_dim)
    B, class_dim, aux_dim, proj_dim = 8, 32, 16, 128

    key = jax.random.PRNGKey(0)
    k_cls, k_aux, k_w1, k_b1, k_w2, k_b2 = jax.random.split(key, 6)

    class_features = jax.random.normal(k_cls, (B, class_dim), dtype=jnp.float32)
    aux_features = jax.random.normal(k_aux, (B, aux_dim), dtype=jnp.float32)

    # Deterministic parameter init (synthetic weights, not a checkpoint).
    w1 = jax.random.normal(k_w1, (aux_dim, proj_dim), dtype=jnp.float32) * 0.05
    b1 = jax.random.normal(k_b1, (1, proj_dim), dtype=jnp.float32) * 0.01
    w2 = jax.random.normal(k_w2, (proj_dim, class_dim), dtype=jnp.float32) * 0.05
    b2 = jax.random.normal(k_b2, (1, class_dim), dtype=jnp.float32) * 0.01

    loss = adv_loss(class_features, aux_features, w1, b1, w2, b2)
    jax.block_until_ready(loss)

    ref = adv_loss_ref(class_features, aux_features, w1, b1, w2, b2)
    assert jnp.allclose(loss, ref, atol=1e-5, rtol=1e-5), (loss, ref)

    print("KERNEL_OK")
</pallas_src>

<mosaic_0001>
module attributes {stable_mosaic.version = 11 : i64} {
  func.func @adv_loss_kernel(%arg0: memref<8x32xf32, #tpu.memory_space<vmem>>, %arg1: memref<8x16xf32, #tpu.memory_space<vmem>>, %arg2: memref<16x128xf32, #tpu.memory_space<vmem>>, %arg3: memref<1x128xf32, #tpu.memory_space<vmem>>, %arg4: memref<128x32xf32, #tpu.memory_space<vmem>>, %arg5: memref<1x32xf32, #tpu.memory_space<vmem>>, %arg6: memref<1x1xf32, #tpu.memory_space<smem>>) attributes {dimension_semantics = [], scalar_prefetch = 0 : i64, scratch_operands = 0 : i64, tpu.core_type = #tpu.core_type<tc>} {
    %c0 = arith.constant 0 : index
    %c0_0 = arith.constant 0 : index
    %0 = vector.load %arg0[%c0, %c0_0] : memref<8x32xf32, #tpu.memory_space<vmem>>, vector<8x32xf32>
    %c0_1 = arith.constant 0 : index
    %c0_2 = arith.constant 0 : index
    %1 = vector.load %arg1[%c0_1, %c0_2] : memref<8x16xf32, #tpu.memory_space<vmem>>, vector<8x16xf32>
    %2 = arith.mulf %1, %1 : vector<8x16xf32>
    %cst = arith.constant dense<0.000000e+00> : vector<8xf32>
    %3 = vector.multi_reduction <add>, %2, %cst [1] : vector<8x16xf32> to vector<8xf32>
    %4 = vector.shape_cast %3 : vector<8xf32> to vector<8x1xf32>
    %cst_3 = arith.constant 1.000000e-24 : f32
    %5 = vector.broadcast %cst_3 : f32 to vector<8x1xf32>
    %6 = arith.maximumf %4, %5 : vector<8x1xf32>
    %7 = math.rsqrt %6 : vector<8x1xf32>
    %8 = vector.broadcast %7 : vector<8x1xf32> to vector<8x16xf32>
    %9 = arith.mulf %1, %8 : vector<8x16xf32>
    %c0_4 = arith.constant 0 : index
    %c0_5 = arith.constant 0 : index
    %10 = vector.load %arg2[%c0_4, %c0_5] : memref<16x128xf32, #tpu.memory_space<vmem>>, vector<16x128xf32>
    %cst_6 = arith.constant dense<0.000000e+00> : vector<8x128xf32>
    %11 = tpu.matmul %9, %10, %cst_6 {dimension_numbers = #tpu.dot_dimension_numbers<[1], [0], [0], [1], [0, 0, 1, 1], [], []>} : vector<8x16xf32>, vector<16x128xf32>, vector<8x128xf32> -> vector<8x128xf32>
    %c0_7 = arith.constant 0 : index
    %c0_8 = arith.constant 0 : index
    %12 = vector.load %arg3[%c0_7, %c0_8] : memref<1x128xf32, #tpu.memory_space<vmem>>, vector<1x128xf32>
    %13 = vector.broadcast %12 : vector<1x128xf32> to vector<8x128xf32>
    %14 = arith.addf %11, %13 : vector<8x128xf32>
    %cst_9 = arith.constant 0.000000e+00 : f32
    %15 = vector.broadcast %cst_9 : f32 to vector<8x128xf32>
    %16 = arith.maximumf %14, %15 : vector<8x128xf32>
    %c0_10 = arith.constant 0 : index
    %c0_11 = arith.constant 0 : index
    %17 = vector.load %arg4[%c0_10, %c0_11] : memref<128x32xf32, #tpu.memory_space<vmem>>, vector<128x32xf32>
    %cst_12 = arith.constant dense<0.000000e+00> : vector<8x32xf32>
    %18 = tpu.matmul %16, %17, %cst_12 {dimension_numbers = #tpu.dot_dimension_numbers<[1], [0], [0], [1], [0, 0, 1, 1], [], []>} : vector<8x128xf32>, vector<128x32xf32>, vector<8x32xf32> -> vector<8x32xf32>
    %c0_13 = arith.constant 0 : index
    %c0_14 = arith.constant 0 : index
    %19 = vector.load %arg5[%c0_13, %c0_14] : memref<1x32xf32, #tpu.memory_space<vmem>>, vector<1x32xf32>
    %20 = vector.broadcast %19 : vector<1x32xf32> to vector<8x32xf32>
    %21 = arith.addf %18, %20 : vector<8x32xf32>
    %22 = arith.mulf %0, %0 : vector<8x32xf32>
    %cst_15 = arith.constant dense<0.000000e+00> : vector<8xf32>
    %23 = vector.multi_reduction <add>, %22, %cst_15 [1] : vector<8x32xf32> to vector<8xf32>
    %24 = vector.shape_cast %23 : vector<8xf32> to vector<8x1xf32>
    %cst_16 = arith.constant 1.000000e-24 : f32
    %25 = vector.broadcast %cst_16 : f32 to vector<8x1xf32>
    %26 = arith.maximumf %24, %25 : vector<8x1xf32>
    %27 = arith.mulf %21, %21 : vector<8x32xf32>
    %cst_17 = arith.constant dense<0.000000e+00> : vector<8xf32>
    %28 = vector.multi_reduction <add>, %27, %cst_17 [1] : vector<8x32xf32> to vector<8xf32>
    %29 = vector.shape_cast %28 : vector<8xf32> to vector<8x1xf32>
    %cst_18 = arith.constant 1.000000e-24 : f32
    %30 = vector.broadcast %cst_18 : f32 to vector<8x1xf32>
    %31 = arith.maximumf %29, %30 : vector<8x1xf32>
    %32 = arith.mulf %0, %21 : vector<8x32xf32>
    %33 = arith.mulf %32, %32 : vector<8x32xf32>
    %cst_19 = arith.constant dense<0.000000e+00> : vector<8xf32>
    %34 = vector.multi_reduction <add>, %33, %cst_19 [1] : vector<8x32xf32> to vector<8xf32>
    %35 = vector.shape_cast %34 : vector<8xf32> to vector<8x1xf32>
    %36 = arith.mulf %26, %31 : vector<8x1xf32>
    %37 = arith.divf %35, %36 : vector<8x1xf32>
    %38 = vector.shape_cast %37 : vector<8x1xf32> to vector<1x8x1xf32>
    %cst_20 = arith.constant dense<0.000000e+00> : vector<1xf32>
    %39 = vector.multi_reduction <add>, %38, %cst_20 [1, 2] : vector<1x8x1xf32> to vector<1xf32>
    %40 = vector.shape_cast %39 : vector<1xf32> to vector<1x1x1xf32>
    %41 = vector.extract %40[0, 0, 0] : f32 from vector<1x1x1xf32>
    %cst_21 = arith.constant -3.906250e-03 : f32
    %42 = arith.mulf %cst_21, %41 : f32
    %c0_22 = arith.constant 0 : index
    %c0_23 = arith.constant 0 : index
    %43 = memref.load %arg6[%c0_22, %c0_23] : memref<1x1xf32, #tpu.memory_space<smem>>
    memref.store %42, %arg6[%c0_22, %c0_23] : memref<1x1xf32, #tpu.memory_space<smem>>
    return
  }
}

</mosaic_0001>

<bundles_post_ra>
// kernel: tpu_custom_call.1
= control target key start
LH: loop header
LB: loop body
LE: loop exit
PB: predicated region body
PF: predicated region fallthrough
CT: control target
= control target key end

     0   :  { %vm27_vm0 = vcmask 130048   ;;  %s489_s0 = inlined_call_operand.vmem [shape: f32[8,32], index: 0, kind: input, shape index: {}]   ;;  %s490_s1 = inlined_call_operand.vmem [shape: f32[8,16], index: 1, kind: input, shape index: {}]   ;;  %s491_s2 = inlined_call_operand.vmem [shape: f32[16,128], index: 2, kind: input, shape index: {}]   ;;  %s492_s3 = inlined_call_operand.vmem [shape: f32[1,128], index: 3, kind: input, shape index: {}]   ;;  %s493_s4 = inlined_call_operand.vmem [shape: f32[128,32], index: 4, kind: input, shape index: {}]   ;;  %s494_s5 = inlined_call_operand.vmem [shape: f32[1,32], index: 5, kind: input, shape index: {}]   ;;  %s495_s6 = inlined_call_operand.hbm [shape: f32[1,1], index: 6, kind: output, shape index: {}]  }
   0x1   :  { %v25_v0 = vld [vmem:[%s490_s1] sm:$0xff] }
   0x2   :  { %11 = vsyncpa [#allocation3], 0  ;;  %v26_v1 = vmul.f32 %v25_v0, %v25_v0  ;;  %v34_v3 = vld [vmem:[%s491_s2] sm:$0xff]  ;;  %v35_v4 = vld [vmem:[%s491_s2 + $0x8] sm:$0xff]  ;;  %v370_v5 = vmov 0.0|0.0   ;;  %vm371_vm1 = vmmov 0  }
   0x3   :  { %321 = vmatprep.subr.bf16.mxu0 %v370_v5  ;;  %v322_v6 = vpack.c.bf16 %v35_v4, %v34_v3  ;;  %v372_v7 = vmov 0.0   ;;  %324 = vmatprep.subr.bf16.mxu1 %v370_v5  ;;  %v117_v8 = vld [vmem:[%s493_s4] sm:$0xff]  ;;  %v118_v9 = vld [vmem:[%s493_s4 + $0x8] sm:$0xff]  ;;  %v119_v10 = vld [vmem:[%s493_s4 + $0x10] sm:$0xff]  ;;  %vm211_vm2 = vcmask 261120   ;;  %vm229_vm3 = vcmask 7168  }
   0x4   :  { %v28_v2 = vsel %vm27_vm0, %v26_v1, 0.0  ;;  %283 = vmatprep.mubr.msk.f32.mxu0 %vm371_vm1, %v372_v7  ;;  %318 = vmatprep.mubr.msk.f32.mxu1 %vm371_vm1, %v372_v7  ;;  %v325_v11 = vpack.c.bf16 %v118_v9, %v117_v8  ;;  %v120_v12 = vld [vmem:[%s493_s4 + $0x18] sm:$0xff]  ;;  %v121_v14 = vld [vmem:[%s493_s4 + $0x20] sm:$0xff]  ;;  %v122_v15 = vld [vmem:[%s493_s4 + $0x28] sm:$0xff]  ;;  %s358_s13 = scalar_lea.hbm %s495_s6, 16 }
   0x5   :  { %29 = vadd.xlane.f32.xlu0 %v28_v2  ;;  %323 = vmatpush3.bf16.msra.mxu0 %v322_v6  ;;  %v328_v13 = vpack.c.bf16 %v120_v12, %v119_v10  ;;  %v331_v16 = vpack.c.bf16 %v122_v15, %v121_v14  ;;  %v123_v17 = vld [vmem:[%s493_s4 + $0x30] sm:$0xff]  ;;  %v124_v18 = vld [vmem:[%s493_s4 + $0x38] sm:$0xff]  ;;  %v125_v20 = vld [vmem:[%s493_s4 + $0x40] sm:$0xff]  ;;  %p359_p0 = scmp.ne.s32.totalorder %s495_s6, %s358_s13  ;;  %p362_p1 = scmp.lt.u32.totalorder %s358_s13, %s495_s6 }
   0x6   :  { %326 = vmatpush3.bf16.msra.mxu1 %v325_v11  ;;  %v334_v19 = vpack.c.bf16 %v124_v18, %v123_v17  ;;  %v126_v21 = vld [vmem:[%s493_s4 + $0x48] sm:$0xff]  ;;  %v127_v23 = vld [vmem:[%s493_s4 + $0x50] sm:$0xff]  ;;  %v128_v24 = vld [vmem:[%s493_s4 + $0x58] sm:$0xff] }
   0x7   :  { %327 = vmatprep.subr.bf16.mxu1 %v370_v5  ;;  %v337_v22 = vpack.c.bf16 %v126_v21, %v125_v20  ;;  %v340_v25 = vpack.c.bf16 %v128_v24, %v127_v23  ;;  %v129_v26 = vld [vmem:[%s493_s4 + $0x60] sm:$0xff]  ;;  %v130_v27 = vld [vmem:[%s493_s4 + $0x68] sm:$0xff]  ;;  %v131_v33 = vld [vmem:[%s493_s4 + $0x70] sm:$0xff]  ;;  %p364_p2 = pnand %p362_p1, %p359_p0 }
   0x8   :  { %v343_v28 = vpack.c.bf16 %v130_v27, %v129_v26  ;;  %v132_v34 = vld [vmem:[%s493_s4 + $0x78] sm:$0xff]  ;;  %v256_v36 = vld [vmem:[%s492_s3] ss:$0 sm:$0xff] }
   0x9   :  { %v346_v35 = vpack.c.bf16 %v132_v34, %v131_v33  ;;  %v24_v41 = vld [vmem:[%s489_s0] sm:$0xff] }
   0xa   :  { %329 = vmatpush3.bf16.msra.mxu1 %v328_v13  ;;  %v210_v42 = vmul.f32 %v24_v41, %v24_v41  ;;  %v258_v44 = vld [vmem:[%s494_s5] ss:$0 sm:$0xff] }
   0xb   :  { %330 = vmatprep.subr.bf16.mxu1 %v370_v5 }
   0xc   :  { %v212_v43 = vsel %vm211_vm2, %v210_v42, 0.0 }
   0xd   :  { %213 = vadd.xlane.f32.xlu0 %v212_v43 }
   0xe   :  { %332 = vmatpush3.bf16.msra.mxu1 %v331_v16 }
   0xf   :  { %333 = vmatprep.subr.bf16.mxu1 %v370_v5 }
  0x12   :  { %335 = vmatpush3.bf16.msra.mxu1 %v334_v19 }
  0x13   :  { %336 = vmatprep.subr.bf16.mxu1 %v370_v5 }
  0x16   :  { %338 = vmatpush3.bf16.msra.mxu1 %v337_v22 }
  0x17   :  { %339 = vmatprep.subr.bf16.mxu1 %v370_v5 }
  0x1a   :  { %341 = vmatpush3.bf16.msra.mxu1 %v340_v25 }
  0x1b   :  { %342 = vmatprep.subr.bf16.mxu1 %v370_v5 }
  0x1e   :  { %344 = vmatpush3.bf16.msra.mxu1 %v343_v28 }
  0x1f   :  { %345 = vmatprep.subr.bf16.mxu1 %v370_v5 }
  0x22   :  { %347 = vmatpush3.bf16.msra.mxu1 %v346_v35 }
  0x92   :  { %v30_v29 = vpop.xlane.xlu0 %29 }
  0x93   :  { %v31_v30 = vmax.f32 %v30_v29, 1e-24 }
  0x95   :  { %354 = vrsqrt.f32 %v31_v30 }
  0x9a   :  { %v214_v53 = vpop.xlane.xlu0 %213 }
  0x9b   :  { %v215_v54 = vmax.f32 %v214_v53, 1e-24 }
  0x9f   :  { %v355_v31 = vpop.eup %354 }
  0xa0   :  { %v33_v32 = vmul.f32 %v355_v31, %v25_v0 }
  0xa2   :  { %284 = vmatmul.mubr.msk.f32.vlgmr.msra.gmra.mrb[0].mxu0 %vm27_vm0, %v33_v32 }
 0x175   :  { %v112_v37 = vpop.f32.mrb[0].mxu0 }
 0x176   :  { %v113_v38 = vadd.f32 %v256_v36, %v112_v37  ;;  %v285_v39 = vpop.f32.mrb[1].mxu0 }
 0x178   :  { %v116_v40 = vmax.f32 %v113_v38, 0.0 }
 0x17a   :  { %319 = vmatmul.mubr.f32.vlgmr.msra.gmra.mrb[0].mxu1 %v116_v40 }
 0x24d   :  { %v206_v45 = vpop.f32.mrb[0].mxu1 }
 0x24e   :  { %v207_v46 = vadd.f32 %v258_v44, %v206_v45  ;;  %v320_v47 = vpop.f32.mrb[1].mxu1 }
 0x250   :  { %v221_v48 = vmul.f32 %v207_v46, %v24_v41  ;;  %v216_v49 = vmul.f32 %v207_v46, %v207_v46 }
 0x252   :  { %v217_v50 = vsel %vm211_vm2, %v216_v49, 0.0  ;;  %v222_v51 = vmul.f32 %v221_v48, %v221_v48 }
 0x253   :  { %218 = vadd.xlane.f32.xlu1 %v217_v50 }
 0x254   :  { %v223_v52 = vsel %vm211_vm2, %v222_v51, 0.0 }
 0x257   :  { %224 = vadd.xlane.f32.xlu1 %v223_v52 }
 0x2e0   :  { %v219_v55 = vpop.xlane.xlu1 %218 }
 0x2e1   :  { %v220_v56 = vmax.f32 %v219_v55, 1e-24 }
 0x2e3   :  { %v226_v57 = vmul.f32 %v220_v56, %v215_v54 }
 0x2e4   :  { %v225_v59 = vpop.xlane.xlu1 %224 }
 0x2e5   :  { %356 = vrcp.f32 %v226_v57 }
 0x2ef   :  { %v357_v58 = vpop.eup %356 }
 0x2f0   :  { %v228_v60 = vmul.f32 %v357_v58, %v225_v59 }
 0x2f2   :  { %v230_v61 = vsel %vm229_vm3, %v228_v60, 0.0 }
 0x2f3   :  { %231 = vadd.xlane.f32.xlu0 %v230_v61 }
 0x380   :  { %v232_v62 = vpop.xlane.xlu0 %231 }
 0x381   :  { %v233_v63 = vrot.slane %v232_v62, 4 }
 0x383   :  { %v234_v0 = vadd.f32 %v233_v63, %v232_v62 }
 0x385   :  { %v235_v1 = vrot.slane %v234_v0, 2 }
 0x387   :  { %v236_v2 = vadd.f32 %v235_v1, %v234_v0 }
 0x389   :  { %v237_v3 = vrot.slane %v236_v2, 1 }
 0x38b   :  { %v238_v4 = vadd.f32 %v237_v3, %v236_v2 }
 0x38d   :  { %348 = vpush %v238_v4 }
 0x3be   :  { %s349_s0 = spop %348 }
 0x3bf   :  { %s240_s3 = smul.f32 -0.00390625, %s349_s0 }
 0x3c1   :  { %242 = sst [smem:[#allocation2]] %s240_s3 }
 0x3c2   :  { %367 = shalt.err (!%p364_p2)
}
 0x3c3   :  { %s373_s18 = smov [#allocation2]  }
 0x3c4   :  { %250 = dma.smem_to_hbm %s373_s18, 16, %s495_s6, [#allocation3]  }
 0x3c5   :  { %368 = dma.done.wait [#allocation3], 16  }
 0x3c6   :  { %369 = vsyncadd [#allocation3], 4294967280 }
 0x3c7   :  { %254 = sfence }
 0x3c8   :  { %255 = vsyncpa [#allocation3], 1 }

</bundles_post_ra>
